<compile_context>
chip_gen: v5e
topology: v5e:2x2
jax: 0.10.0
libtpu: 0.0.40
codegen_flags: <defaults>
</compile_context>

<pallas_src>
import functools

import jax
import jax.numpy as jnp
from jax import lax
from jax.experimental import pallas as pl
from jax.experimental.pallas import tpu as pltpu


# ----------------------------- helpers ---------------------------------------


def _round_up(n, m):
    return ((n + m - 1) // m) * m


def _sublane_multiple(dtype):
    # Sub-32-bit dtypes pack along sublanes (bf16 vreg = 16x128, int8 = 32x128).
    return max(8, 32 // jnp.dtype(dtype).itemsize)


def _vmem_budget_bytes():
    cap = 64 * 1024 * 1024  # conservative fallback = v7x physical per-TC VMEM
    try:
        info = pltpu.get_tpu_info()
        cap = int(getattr(info, "vmem_capacity_bytes", cap) or cap)
    except Exception:
        pass
    # Leave headroom for Mosaic internal scratch / semaphores:
    # -> ~48 MiB budget on v7x (64 MiB parts), ~96 MiB on v5e/v6e (128 MiB parts).
    return (cap * 3) // 4


def _resident_footprint(tile, d, x_sz, w_sz, out_sz):
    weight = d * d * w_sz                 # Buffered(1): single copy
    x_io = 2 * tile * d * x_sz            # double-buffered input row tiles
    out_io = 2 * tile * d * out_sz        # double-buffered output row tiles
    temps = 4 * tile * d * 4              # f32 h / r / out live ranges (headroom)
    params = 3 * 2 * d * 4                # bias / gamma / beta
    return weight + x_io + out_io + temps + params


def _kstream_footprint(tile, d, tk, x_sz, w_sz, out_sz):
    w_io = 2 * tk * d * w_sz              # double-buffered weight slabs
    x_io = 2 * tile * tk * x_sz           # double-buffered x slabs
    out_io = 2 * tile * d * out_sz
    scratch = tile * d * 4 + tile * d * x_sz   # f32 acc + full-width x stash
    temps = 3 * tile * d * 4
    params = 3 * 2 * d * 4
    return w_io + x_io + out_io + scratch + temps + params


def _pick_row_tile(n_rows, sublane, fits, max_tile):
    cap = min(_round_up(n_rows, sublane), _round_up(max_tile, sublane))
    t = cap
    while t > sublane and not fits(t):
        if t > 128:
            t = _round_up(t // 2, 128)
        else:
            t = max(sublane, _round_up(t // 2, sublane))
    return t


# ----------------------------- kernels ---------------------------------------


def tower_block_kernel(x_ref, w_ref, b_ref, gamma_ref, beta_ref, o_ref, *,
                       eps, inv_d, cast_bf16):
    """Resident-weight path: one MXU matmul per row tile + fused epilogue."""
    x = x_ref[...]                                        # (tile, D), native dtype
    xm = x.astype(jnp.bfloat16) if cast_bf16 else x

    # Linear: x @ W^T + b (W passed pre-transposed as (in, out)); f32 accumulate.
    h = jnp.dot(xm, w_ref[...], preferred_element_type=jnp.float32)
    h = h + b_ref[...].astype(jnp.float32)
    h = jnp.maximum(h, 0.0)                               # ReLU

    # Dropout (eval mode) = identity; residual add in f32.
    r = h + x.astype(jnp.float32)

    # One-pass LayerNorm statistics: E[r], E[r^2].
    s = jnp.sum(r, axis=-1, keepdims=True)
    ss = jnp.sum(r * r, axis=-1, keepdims=True)
    mean = s * inv_d
    var = jnp.maximum(ss * inv_d - mean * mean, 0.0)
    inv_std = lax.rsqrt(var + eps)

    out = (r - mean) * inv_std
    out = out * gamma_ref[...].astype(jnp.float32) + beta_ref[...].astype(jnp.float32)
    o_ref[...] = out.astype(o_ref.dtype)


def tower_block_kstream_kernel(x_ref, w_ref, b_ref, gamma_ref, beta_ref, o_ref,
                               acc_ref, xfull_ref, *, eps, inv_d, tk, cast_bf16):
    """K-streaming path for large D: weight streamed in (tk, D) slabs."""
    k = pl.program_id(1)
    nk = pl.num_programs(1)

    x = x_ref[...]                                        # (tile, tk)
    xm = x.astype(jnp.bfloat16) if cast_bf16 else x

    @pl.when(k == 0)
    def _():
        acc_ref[...] = jnp.zeros_like(acc_ref)

    acc_ref[...] += jnp.dot(xm, w_ref[...], preferred_element_type=jnp.float32)

    # Stash this K-slab of x so the residual add reads x from HBM only once.
    off = pl.multiple_of(k * tk, tk)
    xfull_ref[:, pl.ds(off, tk)] = x

    @pl.when(k == nk - 1)
    def _():
        h = acc_ref[...] + b_ref[...].astype(jnp.float32)
        h = jnp.maximum(h, 0.0)
        r = h + xfull_ref[...].astype(jnp.float32)
        s = jnp.sum(r, axis=-1, keepdims=True)
        ss = jnp.sum(r * r, axis=-1, keepdims=True)
        mean = s * inv_d
        var = jnp.maximum(ss * inv_d - mean * mean, 0.0)
        inv_std = lax.rsqrt(var + eps)
        out = (r - mean) * inv_std
        out = out * gamma_ref[...].astype(jnp.float32) + beta_ref[...].astype(jnp.float32)
        o_ref[...] = out.astype(o_ref.dtype)


# ----------------------------- wrapper ----------------------------------------


def tower_block(x, w, b, gamma, beta, *, eps, row_tile=None, k_tile=None,
                matmul_in_bf16=False, k_stream_threshold=2048):
    """x: [..., hidden]; w: [hidden_in, hidden_out] (pre-transposed Linear weight)."""
    orig_shape = x.shape
    D = orig_shape[-1]
    assert w.shape == (D, D), "residual add requires input_dim == output_dim"
    x2 = x.reshape(-1, D)
    N = x2.shape[0]

    cast_x_bf16 = bool(matmul_in_bf16) and x2.dtype == jnp.float32
    if matmul_in_bf16 and w.dtype == jnp.float32:
        # One-time wrapper cast: halves weight HBM traffic and VMEM footprint.
        w = w.astype(jnp.bfloat16)

    x_sz = jnp.dtype(x2.dtype).itemsize
    w_sz = jnp.dtype(w.dtype).itemsize
    out_sz = x_sz
    sublane = _sublane_multiple(x2.dtype)
    budget = _vmem_budget_bytes()

    b2 = b.reshape(1, D)
    gamma2 = gamma.reshape(1, D)
    beta2 = beta.reshape(1, D)

    # --- choose path: resident weight vs. K-streaming ------------------------
    use_kstream = k_tile is not None
    if not use_kstream and D % 128 == 0:
        too_big = _resident_footprint(sublane, D, x_sz, w_sz, out_sz) > budget
        use_kstream = (D >= k_stream_threshold) or too_big
    # TODO(synk): if D is large and not a 128-multiple, pad the feature dim at
    # the model level (lane-sparse D is a multi-x perf penalty on TPU).

    if use_kstream:
        if k_tile is None:
            k_tile = 512 if D % 512 == 0 else (256 if D % 256 == 0 else 128)
        assert D % k_tile == 0 and k_tile % 128 == 0, \
            "k_tile must be a multiple of 128 that divides D"

    max_tile = 512 if row_tile is None else row_tile
    if use_kstream:
        foot = lambda t: _kstream_footprint(t, D, k_tile, x_sz, w_sz, out_sz)
    else:
        foot = lambda t: _resident_footprint(t, D, x_sz, w_sz, out_sz)
    tile = _pick_row_tile(N, sublane, lambda t: foot(t) <= budget, max_tile)
    grid_rows = pl.cdiv(N, tile)
    vmem_limit = int(max(budget, foot(tile)))

    single = pl.Buffered(1)  # grid-invariant operands: one buffer, fetched once
    # TODO(synk): verify in a trace that Buffered(1) + constant index_map issues
    # these DMAs exactly once across the grid; fall back to Buffered(2) otherwise.

    if not use_kstream:
        kernel = functools.partial(tower_block_kernel, eps=float(eps),
                                   inv_d=1.0 / D, cast_bf16=cast_x_bf16)
        out = pl.pallas_call(
            kernel,
            out_shape=jax.ShapeDtypeStruct((N, D), x.dtype),
            grid_spec=pltpu.PrefetchScalarGridSpec(
                num_scalar_prefetch=0,
                grid=(grid_rows,),
                in_specs=[
                    pl.BlockSpec((tile, D), lambda i: (i, 0)),                     # x rows
                    pl.BlockSpec((D, D), lambda i: (0, 0), pipeline_mode=single),  # weight
                    pl.BlockSpec((1, D), lambda i: (0, 0), pipeline_mode=single),  # bias
                    pl.BlockSpec((1, D), lambda i: (0, 0), pipeline_mode=single),  # gamma
                    pl.BlockSpec((1, D), lambda i: (0, 0), pipeline_mode=single),  # beta
                ],
                out_specs=pl.BlockSpec((tile, D), lambda i: (i, 0)),
            ),
            compiler_params=pltpu.CompilerParams(
                # TODO(synk): on v7x verify both TensorCores are busy; if one is
                # idle, switch this axis to pltpu.CORE_PARALLEL.
                dimension_semantics=("parallel",),
                vmem_limit_bytes=vmem_limit,
            ),
        )(x2, w, b2, gamma2, beta2)
    else:
        kernel = functools.partial(tower_block_kstream_kernel, eps=float(eps),
                                   inv_d=1.0 / D, tk=int(k_tile),
                                   cast_bf16=cast_x_bf16)
        out = pl.pallas_call(
            kernel,
            out_shape=jax.ShapeDtypeStruct((N, D), x.dtype),
            grid_spec=pltpu.PrefetchScalarGridSpec(
                num_scalar_prefetch=0,
                grid=(grid_rows, D // k_tile),
                in_specs=[
                    pl.BlockSpec((tile, k_tile), lambda i, k: (i, k)),   # x K-slab
                    pl.BlockSpec((k_tile, D), lambda i, k: (k, 0)),      # weight slab
                    pl.BlockSpec((1, D), lambda i, k: (0, 0), pipeline_mode=single),
                    pl.BlockSpec((1, D), lambda i, k: (0, 0), pipeline_mode=single),
                    pl.BlockSpec((1, D), lambda i, k: (0, 0), pipeline_mode=single),
                ],
                out_specs=pl.BlockSpec((tile, D), lambda i, k: (i, 0)),
                scratch_shapes=[
                    pltpu.VMEM((tile, D), jnp.float32),   # f32 matmul accumulator
                    pltpu.VMEM((tile, D), x2.dtype),      # full-width x for residual
                ],
            ),
            compiler_params=pltpu.CompilerParams(
                dimension_semantics=("parallel", "arbitrary"),
                vmem_limit_bytes=vmem_limit,
            ),
        )(x2, w, b2, gamma2, beta2)

    return out.reshape(orig_shape)


# ----------------------------- reference --------------------------------------


def reference_tower_block(x, w, b, gamma, beta, *, eps):
    """Pure-JAX reference (PyTorch eval-mode semantics, two-pass LayerNorm)."""
    xf = x.astype(jnp.float32)
    h = jnp.einsum("...i,io->...o", xf, w.astype(jnp.float32)) + b.astype(jnp.float32)
    h = jnp.maximum(h, 0.0)
    r = h + xf
    mean = jnp.mean(r, axis=-1, keepdims=True)
    var = jnp.mean((r - mean) ** 2, axis=-1, keepdims=True)
    norm = (r - mean) / jnp.sqrt(var + eps)
    out = norm * gamma.astype(jnp.float32) + beta.astype(jnp.float32)
    return out.astype(x.dtype)


if __name__ == "__main__":
    eps = 1e-5
    initializer_range = 0.02
    key = jax.random.PRNGKey(0)
    k_x, k_w, k_w2, k_x2, k_x3 = jax.random.split(key, 5)

    # Case 1: resident-weight path (batch=2, seq=8, hidden=32).
    batch, seq, hidden = 2, 8, 32
    x = jax.random.normal(k_x, (batch, seq, hidden), dtype=jnp.float32)
    # nn.Linear: trunc_normal(std=0.02, a=-0.04, b=0.04) weight, zero bias.
    # PyTorch weight is [out, in]; stored pre-transposed as [in, out].
    w_t = (jax.random.truncated_normal(k_w, -2.0, 2.0, (hidden, hidden),
                                       dtype=jnp.float32) * initializer_range)
    b = jnp.zeros((hidden,), dtype=jnp.float32)
    gamma = jnp.ones((hidden,), dtype=jnp.float32)    # nn.LayerNorm defaults
    beta = jnp.zeros((hidden,), dtype=jnp.float32)

    out = jax.block_until_ready(tower_block(x, w_t, b, gamma, beta, eps=eps))
    ref = reference_tower_block(x, w_t, b, gamma, beta, eps=eps)
    assert out.shape == x.shape
    assert jnp.allclose(out, ref, atol=5e-5, rtol=5e-5), "mismatch (resident)"

    # Case 2: ragged row count -> partial last row tile (no wrapper pad/slice).
    x_odd = jax.random.normal(k_x2, (3, 7, hidden), dtype=jnp.float32)
    out_odd = jax.block_until_ready(tower_block(x_odd, w_t, b, gamma, beta, eps=eps))
    ref_odd = reference_tower_block(x_odd, w_t, b, gamma, beta, eps=eps)
    assert out_odd.shape == x_odd.shape
    assert jnp.allclose(out_odd, ref_odd, atol=5e-5, rtol=5e-5), "mismatch (ragged)"

    # Case 3: K-streaming path, forced with k_tile=128 at hidden=256.
    hidden2 = 256
    x_big = jax.random.normal(k_x3, (2, 8, hidden2), dtype=jnp.float32)
    w2 = (jax.random.truncated_normal(k_w2, -2.0, 2.0, (hidden2, hidden2),
                                      dtype=jnp.float32) * initializer_range)
    b2 = jnp.zeros((hidden2,), dtype=jnp.float32)
    g2 = jnp.ones((hidden2,), dtype=jnp.float32)
    be2 = jnp.zeros((hidden2,), dtype=jnp.float32)
    out_ks = jax.block_until_ready(
        tower_block(x_big, w2, b2, g2, be2, eps=eps, k_tile=128))
    ref_ks = reference_tower_block(x_big, w2, b2, g2, be2, eps=eps)
    assert out_ks.shape == x_big.shape
    assert jnp.allclose(out_ks, ref_ks, atol=5e-5, rtol=5e-5), "mismatch (k-stream)"

    # Case 4: optional bf16 MXU operands for f32 models (loose tolerance).
    out_bf = jax.block_until_ready(
        tower_block(x, w_t, b, gamma, beta, eps=eps, matmul_in_bf16=True))
    assert jnp.allclose(out_bf, ref, atol=5e-2, rtol=5e-2), "mismatch (bf16 matmul)"

    print("KERNEL_OK")
</pallas_src>

<mosaic_0001>
module attributes {stable_mosaic.version = 11 : i64} {
  func.func @tower_block_kernel(%arg0: i32, %arg1: memref<16x32xf32, #tpu.memory_space<vmem>>, %arg2: memref<32x32xf32, #tpu.memory_space<vmem>>, %arg3: memref<1x32xf32, #tpu.memory_space<vmem>>, %arg4: memref<1x32xf32, #tpu.memory_space<vmem>>, %arg5: memref<1x32xf32, #tpu.memory_space<vmem>>, %arg6: memref<16x32xf32, #tpu.memory_space<vmem>>) attributes {dimension_semantics = [#tpu.dimension_semantics<parallel>], iteration_bounds = array<i64: 1>, scalar_prefetch = 0 : i64, scratch_operands = 0 : i64, tpu.core_type = #tpu.core_type<tc>, window_params = [{transform_indices = @transform_0, window_bounds = array<i64: 16, 32>}, {pipeline_mode = #tpu.pipeline_mode<synchronous>, transform_indices = @transform_1, window_bounds = array<i64: 32, 32>}, {pipeline_mode = #tpu.pipeline_mode<synchronous>, transform_indices = @transform_2, window_bounds = array<i64: 1, 32>}, {pipeline_mode = #tpu.pipeline_mode<synchronous>, transform_indices = @transform_3, window_bounds = array<i64: 1, 32>}, {pipeline_mode = #tpu.pipeline_mode<synchronous>, transform_indices = @transform_4, window_bounds = array<i64: 1, 32>}, {transform_indices = @transform_5, window_bounds = array<i64: 16, 32>}]} {
    %c0 = arith.constant 0 : index
    %c0_0 = arith.constant 0 : index
    %0 = vector.load %arg1[%c0, %c0_0] : memref<16x32xf32, #tpu.memory_space<vmem>>, vector<16x32xf32>
    %c0_1 = arith.constant 0 : index
    %c0_2 = arith.constant 0 : index
    %1 = vector.load %arg2[%c0_1, %c0_2] : memref<32x32xf32, #tpu.memory_space<vmem>>, vector<32x32xf32>
    %cst = arith.constant dense<0.000000e+00> : vector<16x32xf32>
    %2 = tpu.matmul %0, %1, %cst {dimension_numbers = #tpu.dot_dimension_numbers<[1], [0], [0], [1], [0, 0, 1, 1], [], []>} : vector<16x32xf32>, vector<32x32xf32>, vector<16x32xf32> -> vector<16x32xf32>
    %c0_3 = arith.constant 0 : index
    %c0_4 = arith.constant 0 : index
    %3 = vector.load %arg3[%c0_3, %c0_4] : memref<1x32xf32, #tpu.memory_space<vmem>>, vector<1x32xf32>
    %4 = vector.broadcast %3 : vector<1x32xf32> to vector<16x32xf32>
    %5 = arith.addf %2, %4 : vector<16x32xf32>
    %cst_5 = arith.constant 0.000000e+00 : f32
    %6 = vector.broadcast %cst_5 : f32 to vector<16x32xf32>
    %7 = arith.maximumf %5, %6 : vector<16x32xf32>
    %8 = arith.addf %7, %0 : vector<16x32xf32>
    %cst_6 = arith.constant dense<0.000000e+00> : vector<16xf32>
    %9 = vector.multi_reduction <add>, %8, %cst_6 [1] : vector<16x32xf32> to vector<16xf32>
    %10 = vector.shape_cast %9 : vector<16xf32> to vector<16x1xf32>
    %11 = arith.mulf %8, %8 : vector<16x32xf32>
    %cst_7 = arith.constant dense<0.000000e+00> : vector<16xf32>
    %12 = vector.multi_reduction <add>, %11, %cst_7 [1] : vector<16x32xf32> to vector<16xf32>
    %13 = vector.shape_cast %12 : vector<16xf32> to vector<16x1xf32>
    %cst_8 = arith.constant 3.125000e-02 : f32
    %14 = vector.broadcast %cst_8 : f32 to vector<16x1xf32>
    %15 = arith.mulf %10, %14 : vector<16x1xf32>
    %cst_9 = arith.constant 3.125000e-02 : f32
    %16 = vector.broadcast %cst_9 : f32 to vector<16x1xf32>
    %17 = arith.mulf %13, %16 : vector<16x1xf32>
    %18 = arith.mulf %15, %15 : vector<16x1xf32>
    %19 = arith.subf %17, %18 : vector<16x1xf32>
    %cst_10 = arith.constant 0.000000e+00 : f32
    %20 = vector.broadcast %cst_10 : f32 to vector<16x1xf32>
    %21 = arith.maximumf %19, %20 : vector<16x1xf32>
    %cst_11 = arith.constant 9.99999974E-6 : f32
    %22 = vector.broadcast %cst_11 : f32 to vector<16x1xf32>
    %23 = arith.addf %21, %22 : vector<16x1xf32>
    %24 = math.rsqrt %23 : vector<16x1xf32>
    %25 = vector.broadcast %15 : vector<16x1xf32> to vector<16x32xf32>
    %26 = arith.subf %8, %25 : vector<16x32xf32>
    %27 = vector.broadcast %24 : vector<16x1xf32> to vector<16x32xf32>
    %28 = arith.mulf %26, %27 : vector<16x32xf32>
    %c0_12 = arith.constant 0 : index
    %c0_13 = arith.constant 0 : index
    %29 = vector.load %arg4[%c0_12, %c0_13] : memref<1x32xf32, #tpu.memory_space<vmem>>, vector<1x32xf32>
    %30 = vector.broadcast %29 : vector<1x32xf32> to vector<16x32xf32>
    %31 = arith.mulf %28, %30 : vector<16x32xf32>
    %c0_14 = arith.constant 0 : index
    %c0_15 = arith.constant 0 : index
    %32 = vector.load %arg5[%c0_14, %c0_15] : memref<1x32xf32, #tpu.memory_space<vmem>>, vector<1x32xf32>
    %33 = vector.broadcast %32 : vector<1x32xf32> to vector<16x32xf32>
    %34 = arith.addf %31, %33 : vector<16x32xf32>
    %c0_16 = arith.constant 0 : index
    %c0_17 = arith.constant 0 : index
    %35 = vector.load %arg6[%c0_16, %c0_17] : memref<16x32xf32, #tpu.memory_space<vmem>>, vector<16x32xf32>
    tpu.vector_store %arg6[%c0_16, %c0_17], %34 {strides = array<i32>} : memref<16x32xf32, #tpu.memory_space<vmem>>, vector<16x32xf32>,
    return
  }
  func.func @transform_0(%arg0: i32) -> (i32, i32) {
    %c0_i32 = arith.constant 0 : i32
    %c0_i32_0 = arith.constant 0 : i32
    return %arg0, %c0_i32 : i32, i32
  }
  func.func @transform_1(%arg0: i32) -> (i32, i32) {
    %c0_i32 = arith.constant 0 : i32
    %c0_i32_0 = arith.constant 0 : i32
    %c0_i32_1 = arith.constant 0 : i32
    return %c0_i32, %c0_i32_0 : i32, i32
  }
  func.func @transform_2(%arg0: i32) -> (i32, i32) {
    %c0_i32 = arith.constant 0 : i32
    %c0_i32_0 = arith.constant 0 : i32
    %c0_i32_1 = arith.constant 0 : i32
    return %c0_i32, %c0_i32_0 : i32, i32
  }
  func.func @transform_3(%arg0: i32) -> (i32, i32) {
    %c0_i32 = arith.constant 0 : i32
    %c0_i32_0 = arith.constant 0 : i32
    %c0_i32_1 = arith.constant 0 : i32
    return %c0_i32, %c0_i32_0 : i32, i32
  }
  func.func @transform_4(%arg0: i32) -> (i32, i32) {
    %c0_i32 = arith.constant 0 : i32
    %c0_i32_0 = arith.constant 0 : i32
    %c0_i32_1 = arith.constant 0 : i32
    return %c0_i32, %c0_i32_0 : i32, i32
  }
  func.func @transform_5(%arg0: i32) -> (i32, i32) {
    %c0_i32 = arith.constant 0 : i32
    %c0_i32_0 = arith.constant 0 : i32
    return %arg0, %c0_i32 : i32, i32
  }
}

</mosaic_0001>

<bundles_post_ra>
// kernel: tpu_custom_call.1
= control target key start
LH: loop header
LB: loop body
LE: loop exit
PB: predicated region body
PF: predicated region fallthrough
CT: control target
= control target key end

     0   :  { %10 = vsyncpa [#allocation3], 0  ;;  %s347_s0 = inlined_call_operand.hbm [shape: f32[16,32], index: 0, kind: input, shape index: {}]   ;;  %s348_s1 = inlined_call_operand.hbm [shape: f32[32,32], index: 1, kind: input, shape index: {}]   ;;  %s349_s2 = inlined_call_operand.vmem [shape: f32[1,32], index: 2, kind: input, shape index: {}]   ;;  %s350_s3 = inlined_call_operand.vmem [shape: f32[1,32], index: 3, kind: input, shape index: {}]   ;;  %s351_s4 = inlined_call_operand.vmem [shape: f32[1,32], index: 4, kind: input, shape index: {}]   ;;  %s352_s5 = inlined_call_operand.hbm [shape: f32[16,32], index: 5, kind: output, shape index: {}]  }
   0x1   :  { %11 = vsyncpa [#allocation6], 0 }
   0x2   :  { %12 = vsyncpa [#allocation4], 0  ;;  %s17_s20 = sshll.u32 %s347_s0, 4  ;;  %s277_s21 = smov [#allocation2]   ;;  %s18_s20 = int_to_ptr.hbm [resolvable:$true] %s17_s20 }
   0x3   :  { %s19_s22 = sshll.u32 %s277_s21, 4  ;;  %s30_s25 = sshll.u32 %s348_s1, 4  ;;  %s20_s22 = int_to_ptr.vmem [resolvable:$true] %s19_s22  ;;  %s31_s25 = int_to_ptr.hbm [resolvable:$true] %s30_s25 }
   0x4   :  { %s278_s26 = smov 128   ;;  %s279_s27 = smov 8  }
   0x5   :  { %25 = dma.hbm_to_vmem [thread:$0]  %s18_s20, 256, %s20_s22, [#allocation3], %s278_s26, %s278_s26, %s279_s27  }
   0x6   :  { %s280_s28 = smov [#allocation5]  }
   0x7   :  { %s32_s29 = sshll.u32 %s280_s28, 4  ;;  %s33_s29 = int_to_ptr.vmem [resolvable:$true] %s32_s29 }
   0x8   :  { %38 = dma.hbm_to_vmem [thread:$0]  %s31_s25, 512, %s33_s29, [#allocation6], %s278_s26, %s278_s26, %s279_s27  }
   0x9   :  { %271 = dma.done.wait [#allocation3], 256  }
   0xa   :  { %272 = vsyncadd [#allocation3], 4294967040 }
   0xb   :  { %273 = dma.done.wait [#allocation6], 512  }
   0xc   :  { %274 = vsyncadd [#allocation6], 4294966784  ;;  %v58_v0 = vld [vmem:[#allocation5 + $0x18] sm:$0xff]  ;;  %v57_v1 = vld [vmem:[#allocation5 + $0x10] sm:$0xff]  ;;  %vm63_vm0 = vcmask 261120   ;;  %s167_s11 = sshll.u32 %s352_s5, 4  ;;  %s168_s11 = int_to_ptr.hbm [resolvable:$true] %s167_s11 }
   0xd   :  { %82 = vmatpush.msra.mxu0 %v58_v0  ;;  %183 = vmatpush.msra.mxu1 %v58_v0  ;;  %v56_v2 = vld [vmem:[#allocation5 + $0x8] sm:$0xff]  ;;  %v55_v3 = vld [vmem:[#allocation5] sm:$0xff]  ;;  %v53_v4 = vld [vmem:[#allocation2] sm:$0xff] }
   0xe   :  { %v54_v5 = vld [vmem:[#allocation2 + $0x8] sm:$0xff]  ;;  %v192_v6 = vld [vmem:[%s349_s2] ss:$0 sm:$0xff] }
   0xf   :  { %83 = vmatpush.msra.mxu0 %v57_v1  ;;  %184 = vmatpush.msra.mxu1 %v57_v1  ;;  %v193_v46 = vld [vmem:[%s350_s3] ss:$0 sm:$0xff]  ;;  %s281_s3 = smov [#allocation7]  }
  0x10   :  { %v194_v50 = vld [vmem:[%s351_s4] ss:$0 sm:$0xff]  ;;  %s165_s8 = sshll.u32 %s281_s3, 4  ;;  %s166_s8 = int_to_ptr.vmem [resolvable:$true] %s165_s8 }
  0x11   :  { %84 = vmatpush.msra.mxu0 %v56_v2  ;;  %185 = vmatpush.msra.mxu1 %v56_v2 }
  0x13   :  { %85 = vmatpush.msra.mxu0 %v55_v3  ;;  %186 = vmatpush.msra.mxu1 %v55_v3 }
  0x14   :  { %181 = vmatmul.msk.f32.vlgmr.msra.gmra.mxu0 %vm63_vm0, %v53_v4  ;;  %182 = vmatmul.msk.f32.vlgmr.msra.gmra.mxu1 %vm63_vm0, %v54_v5 }
  0x91   :  { %v87_v7 = vpop.f32.mrf.mxu0  ;;  %v90_v8 = vpop.f32.mrf.mxu1 }
  0x92   :  { %v88_v9 = vadd.f32 %v192_v6, %v87_v7  ;;  %v91_v10 = vadd.f32 %v192_v6, %v90_v8 }
  0x94   :  { %v93_v11 = vmax.f32 %v88_v9, 0.0  ;;  %v94_v12 = vmax.f32 %v91_v10, 0.0 }
  0x96   :  { %v95_v13 = vadd.f32 %v93_v11, %v53_v4  ;;  %v96_v14 = vadd.f32 %v94_v12, %v54_v5 }
  0x98   :  { %v97_v15 = vsel %vm63_vm0, %v95_v13, 0.0  ;;  %v103_v16 = vmul.f32 %v95_v13, %v95_v13  ;;  %v104_v18 = vmul.f32 %v96_v14, %v96_v14  ;;  %v100_v19 = vsel %vm63_vm0, %v96_v14, 0.0 }
  0x99   :  { %98 = vadd.xlane.f32.xlu0 %v97_v15 }
  0x9a   :  { %v105_v17 = vsel %vm63_vm0, %v103_v16, 0.0  ;;  %v108_v20 = vsel %vm63_vm0, %v104_v18, 0.0 }
  0x9b   :  { %106 = vadd.xlane.f32.xlu1 %v105_v17 }
  0xa1   :  { %101 = vadd.xlane.f32.xlu0 %v100_v19 }
  0xa3   :  { %109 = vadd.xlane.f32.xlu1 %v108_v20 }
 0x10c   :  { %v99_v21 = vpop.xlane.xlu0 %98 }
 0x10d   :  { %v111_v22 = vmul.f32 0.03125, %v99_v21 }
 0x10e   :  { %v107_v23 = vpop.xlane.xlu1 %106 }
 0x10f   :  { %v115_v24 = vmul.f32 %v111_v22, %v111_v22  ;;  %v113_v25 = vmul.f32 0.03125, %v107_v23  ;;  %v143_v44 = vsub.f32 %v95_v13, %v111_v22 }
 0x111   :  { %v117_v26 = vsub.f32 %v113_v25, %v115_v24 }
 0x113   :  { %v119_v27 = vmax.f32 %v117_v26, 0.0 }
 0x114   :  { %v102_v28 = vpop.xlane.xlu0 %101 }
 0x115   :  { %v121_v29 = vadd.f32 1e-05, %v119_v27  ;;  %v112_v30 = vmul.f32 0.03125, %v102_v28 }
 0x116   :  { %v110_v31 = vpop.xlane.xlu1 %109 }
 0x117   :  { %195 = vrsqrt.f32 %v121_v29  ;;  %v116_v32 = vmul.f32 %v112_v30, %v112_v30  ;;  %v114_v33 = vmul.f32 0.03125, %v110_v31  ;;  %vm129_vm2 = vweird.f32 %v121_v29 }
 0x118   :  { %v144_v56 = vsub.f32 %v96_v14, %v112_v30 }
 0x119   :  { %v118_v34 = vsub.f32 %v114_v33, %v116_v32 }
 0x11b   :  { %v120_v35 = vmax.f32 %v118_v34, 0.0 }
 0x11d   :  { %v196_v36 = vpop.eup %195  ;;  %v122_v38 = vadd.f32 1e-05, %v120_v35 }
 0x11e   :  { %v124_v37 = vmul.f32 %v196_v36, %v121_v29  ;;  %vm130_vm1 = vweird.f32 %v196_v36 }
 0x11f   :  { %197 = vrsqrt.f32 %v122_v38  ;;  %vm131_vm3 = vmor %vm129_vm2, %vm130_vm1  ;;  %vm139_vm5 = vweird.f32 %v122_v38 }
 0x120   :  { %v125_v39 = vmul.f32 %v196_v36, %v124_v37 }
 0x122   :  { %v126_v40 = vmul.f32 0.5, %v125_v39 }
 0x124   :  { %v127_v41 = vsub.f32 1.5, %v126_v40 }
 0x125   :  { %v198_v42 = vpop.eup %197 }
 0x126   :  { %v128_v43 = vmul.f32 %v196_v36, %v127_v41  ;;  %v134_v45 = vmul.f32 %v198_v42, %v122_v38  ;;  %vm140_vm4 = vweird.f32 %v198_v42 }
 0x127   :  { %vm141_vm6 = vmor %vm139_vm5, %vm140_vm4 }
 0x128   :  { %v132_v47 = vsel %vm131_vm3, %v196_v36, %v128_v43  ;;  %v135_v49 = vmul.f32 %v198_v42, %v134_v45 }
 0x129   :  { %v145_v48 = vmul.f32 %v143_v44, %v132_v47 }
 0x12a   :  { %v136_v51 = vmul.f32 0.5, %v135_v49 }
 0x12b   :  { %v151_v52 = vmul.f32 %v193_v46, %v145_v48 }
 0x12c   :  { %v137_v53 = vsub.f32 1.5, %v136_v51 }
 0x12d   :  { %v157_v54 = vadd.f32 %v194_v50, %v151_v52 }
 0x12e   :  { %v138_v55 = vmul.f32 %v198_v42, %v137_v53 }
 0x12f   :  { %159 = vst.msk [vmem:[#allocation7] sm:$0xff] %vm63_vm0, %v157_v54 }
 0x130   :  { %v142_v57 = vsel %vm141_vm6, %v198_v42, %v138_v55 }
 0x131   :  { %v146_v58 = vmul.f32 %v144_v56, %v142_v57 }
 0x133   :  { %v152_v59 = vmul.f32 %v193_v46, %v146_v58 }
 0x135   :  { %v158_v60 = vadd.f32 %v194_v50, %v152_v59 }
 0x137   :  { %160 = vst.msk [vmem:[#allocation7 + $0x8] sm:$0xff] %vm63_vm0, %v158_v60 }
 0x138   :  { %173 = dma.vmem_to_hbm [thread:$0]  %s166_s8, 256, %s168_s11, [#allocation4], %s278_s26, %s278_s26, %s279_s27  }
 0x139   :  { %275 = dma.done.wait [#allocation4], 256  }
 0x13a   :  { %276 = vsyncadd [#allocation4], 4294967040 }
 0x13b   :  { %178 = vsyncpa [#allocation3], 1 }
 0x13c   :  { %179 = vsyncpa [#allocation6], 1 }
 0x13d   :  { %180 = vsyncpa [#allocation4], 1 }

</bundles_post_ra>
